<compile_context>
chip_gen: v6e
topology: v6e:2x2x1
jax: 0.10.0
libtpu: 0.0.40
codegen_flags: <defaults>
</compile_context>

<pallas_src>
import jax
import jax.numpy as jnp
from jax import lax
from jax.experimental import pallas as pl
from jax.experimental.pallas import tpu as pltpu


# ---------------------------------------------------------------------------
# Kernels
# ---------------------------------------------------------------------------
def _attn_over_sublanes_kernel(x_ref, w_ref, alpha_ref, o_ref):
    """'spatial' path: x block is (1, C, TILE_L); softmax over C (sublanes)."""
    x = x_ref[0]                                     # (C, TILE_L) f32
    w = w_ref[...]                                   # (C, C) f32, diag already 1/C
    alpha = alpha_ref[0]                             # clipped scalar (SMEM)

    # logits[c, l] = sum_i W[c, i] * x[i, l]  == F.linear over the codeword axis
    logits = jnp.dot(w, x, preferred_element_type=jnp.float32)            # MXU
    logits = logits - jnp.max(logits, axis=0, keepdims=True)              # XLU
    e = jnp.exp(logits)                                                   # EUP
    inv = pl.reciprocal(jnp.sum(e, axis=0, keepdims=True), approx=True)   # EUP
    mask = e * inv
    # x*alpha + (1-alpha)*x*mask == x * (alpha + (1-alpha)*mask)
    o_ref[0] = (x * (alpha + (1.0 - alpha) * mask)).astype(o_ref.dtype)


def _attn_over_lanes_kernel(x_ref, wt_ref, alpha_ref, o_ref):
    """'temporal' path: x block is (TILE_M, L); softmax over L (lanes)."""
    x = x_ref[...]                                   # (TILE_M, L) f32
    wt = wt_ref[...]                                 # (L, L) f32 == W^T
    alpha = alpha_ref[0]

    logits = jnp.dot(x, wt, preferred_element_type=jnp.float32)           # MXU
    logits = logits - jnp.max(logits, axis=-1, keepdims=True)
    e = jnp.exp(logits)
    inv = pl.reciprocal(jnp.sum(e, axis=-1, keepdims=True), approx=True)
    mask = e * inv
    o_ref[...] = (x * (alpha + (1.0 - alpha) * mask)).astype(o_ref.dtype)


# ---------------------------------------------------------------------------
# Tiling / VMEM helpers
# ---------------------------------------------------------------------------
_X_BUFFER_BUDGET = 24 * 1024 * 1024      # budget for (in + out) double buffers
_VMEM_CEILING = 64 * 1024 * 1024         # v7x physical per-core VMEM


def _round_up(v, m):
    return ((v + m - 1) // m) * m


def _f32_vmem_bytes(rows, cols):
    """VMEM footprint of an f32 (rows, cols) buffer, (8, 128)-tile padded."""
    return _round_up(max(rows, 1), 8) * _round_up(max(cols, 1), 128) * 4


def _pick_tile(full, granule, bytes_per_unit, hard_cap):
    """Largest granule-aligned tile whose 4 pipeline buffers fit the budget
    (or the full extent if it already fits)."""
    budget_units = _X_BUFFER_BUDGET // (4 * bytes_per_unit)
    cap = max(granule, min(hard_cap, (budget_units // granule) * granule))
    return full if full <= cap else cap


def _vmem_limit(x_tile_bytes, w_bytes, w_bufs):
    need = 4 * x_tile_bytes + w_bufs * w_bytes + (2 << 20)   # +2 MiB slack
    return int(min(_VMEM_CEILING, max(32 << 20, need)))


def _w_spec(att_dim, block_shape, index_map):
    # W's index_map is constant -> fetched once, stays resident.  Double
    # buffering it is pure VMEM waste; single-buffer once it's big enough to
    # matter (guarded so tiny-D configs keep the default, well-trodden path).
    if att_dim >= 512:
        return pl.BlockSpec(block_shape, index_map, pipeline_mode=pl.Buffered(1))
    return pl.BlockSpec(block_shape, index_map)


# ---------------------------------------------------------------------------
# Forward wrapper
# ---------------------------------------------------------------------------
def attention_forward(x, w_a, alpha, att_type, *,
                      lane_tile_cap=2048, sublane_tile_cap=2048):
    """Pallas forward of the PyTorch `Attention` module.

    x: (B, n_codeword, series_length) f32.
    att_type: 'spatial' (attend over codewords) or 'temporal' (over time).
    """
    B, C, L = x.shape
    att_dim = C if att_type == "spatial" else L
    assert w_a.shape == (att_dim, att_dim)

    # ---- one-time prep, hoisted out of the kernel ----
    eye = jnp.eye(att_dim, dtype=jnp.float32)
    W = (w_a - w_a * eye + eye / jnp.float32(att_dim)).astype(jnp.float32)
    alpha_c = jnp.clip(alpha.astype(jnp.float32), 0.0, 1.0).reshape((1,))

    if att_type == "spatial":
        # Attend over C in-kernel: no swapaxes; C on sublanes, L on lanes.
        tile_l = _pick_tile(L, 128, _round_up(C, 8) * 4, lane_tile_cap)
        grid = (B, pl.cdiv(L, tile_l))
        x_tile_bytes = _f32_vmem_bytes(C, tile_l)
        w_bytes = _f32_vmem_bytes(C, C)
        w_bufs = 1 if att_dim >= 512 else 2
        return pl.pallas_call(
            _attn_over_sublanes_kernel,
            out_shape=jax.ShapeDtypeStruct((B, C, L), x.dtype),
            grid=grid,
            in_specs=[
                pl.BlockSpec((1, C, tile_l), lambda b, l: (b, 0, l)),
                _w_spec(att_dim, (C, C), lambda b, l: (0, 0)),
                pl.BlockSpec(memory_space=pltpu.MemorySpace.SMEM),   # alpha
            ],
            out_specs=pl.BlockSpec((1, C, tile_l), lambda b, l: (b, 0, l)),
            compiler_params=pltpu.CompilerParams(
                dimension_semantics=("parallel", "parallel"),
                vmem_limit_bytes=_vmem_limit(x_tile_bytes, w_bytes, w_bufs)),
        )(x, W, alpha_c)

    # 'temporal': natural layout; (B, C) flattened to M rows (free reshape),
    # softmax over the lane axis L.  No pad / slice: ragged last block is OOB.
    M = B * C
    x2 = x.reshape(M, L)
    tile_m = _pick_tile(M, 8, _round_up(L, 128) * 4, sublane_tile_cap)
    grid = (pl.cdiv(M, tile_m),)
    x_tile_bytes = _f32_vmem_bytes(tile_m, L)
    w_bytes = _f32_vmem_bytes(L, L)
    w_bufs = 1 if att_dim >= 512 else 2
    out2 = pl.pallas_call(
        _attn_over_lanes_kernel,
        out_shape=jax.ShapeDtypeStruct((M, L), x.dtype),
        grid=grid,
        in_specs=[
            pl.BlockSpec((tile_m, L), lambda m: (m, 0)),
            _w_spec(att_dim, (L, L), lambda m: (0, 0)),
            pl.BlockSpec(memory_space=pltpu.MemorySpace.SMEM),       # alpha
        ],
        out_specs=pl.BlockSpec((tile_m, L), lambda m: (m, 0)),
        compiler_params=pltpu.CompilerParams(
            dimension_semantics=("parallel",),
            vmem_limit_bytes=_vmem_limit(x_tile_bytes, w_bytes, w_bufs)),
    )(x2, W.T, alpha_c)
    return out2.reshape(B, C, L)


# ---------------------------------------------------------------------------
# Pure-JAX reference (mirrors the PyTorch forward; high-precision matmul)
# ---------------------------------------------------------------------------
def attention_ref(x, w_a, alpha, att_type, att_dim):
    if att_type == "spatial":
        x = jnp.swapaxes(x, -1, -2)
    I = jnp.eye(att_dim, dtype=x.dtype)
    W = w_a - w_a * I + I / att_dim
    logits = jnp.einsum("...i,ji->...j", x, W, precision=lax.Precision.HIGHEST)
    mask = jax.nn.softmax(logits, axis=-1)
    a = jnp.clip(alpha[0], 0.0, 1.0)
    x = x * a + (1.0 - a) * x * mask
    if att_type == "spatial":
        x = jnp.swapaxes(x, -1, -2)
    return x


if __name__ == "__main__":
    key = jax.random.PRNGKey(0)
    kx, kw_s, kw_t, kx2, kw2_s, kw2_t = jax.random.split(key, 6)

    # Module-sized example: batch=2, n_codeword=16, series_length=8.
    batch, n_codeword, series_length = 2, 16, 8
    x = jax.random.normal(kx, (batch, n_codeword, series_length), dtype=jnp.float32)
    alpha = jnp.full((1,), 0.5, dtype=jnp.float32)

    for att_type, kw in (("spatial", kw_s), ("temporal", kw_t)):
        att_dim = n_codeword if att_type == "spatial" else series_length
        for w_a in (
            jnp.full((att_dim, att_dim), 1.0 / att_dim, dtype=jnp.float32),  # module init
            0.1 * jax.random.normal(kw, (att_dim, att_dim), dtype=jnp.float32),
        ):
            out = jax.block_until_ready(attention_forward(x, w_a, alpha, att_type))
            ref = attention_ref(x, w_a, alpha, att_type, att_dim)
            assert out.shape == x.shape
            # tolerance covers the EUP approximate reciprocal in the softmax
            assert jnp.allclose(out, ref, atol=2e-3, rtol=2e-3), \
                f"mismatch vs pure-JAX reference ({att_type}, small)"

    # Multi-block / ragged-tail exercise (forces >1 grid step + OOB tail drop).
    xb = jax.random.normal(kx2, (3, 24, 200), dtype=jnp.float32)
    for att_type, kw in (("spatial", kw2_s), ("temporal", kw2_t)):
        att_dim = 24 if att_type == "spatial" else 200
        w_a = 0.05 * jax.random.normal(kw, (att_dim, att_dim), dtype=jnp.float32)
        out = jax.block_until_ready(
            attention_forward(xb, w_a, alpha, att_type,
                              lane_tile_cap=128, sublane_tile_cap=64))
        ref = attention_ref(xb, w_a, alpha, att_type, att_dim)
        assert out.shape == xb.shape
        assert jnp.allclose(out, ref, atol=2e-3, rtol=2e-3), \
            f"mismatch vs pure-JAX reference ({att_type}, ragged)"

    print("KERNEL_OK")
</pallas_src>

<mosaic_0001>
module attributes {stable_mosaic.version = 11 : i64} {
  func.func @_attn_over_sublanes_kernel(%arg0: i32, %arg1: i32, %arg2: memref<1x16x8xf32, #tpu.memory_space<vmem>>, %arg3: memref<16x16xf32, #tpu.memory_space<vmem>>, %arg4: memref<1xf32, #tpu.memory_space<smem>>, %arg5: memref<1x16x8xf32, #tpu.memory_space<vmem>>) attributes {dimension_semantics = [#tpu.dimension_semantics<parallel>, #tpu.dimension_semantics<parallel>], iteration_bounds = array<i64: 2, 1>, scalar_prefetch = 0 : i64, scratch_operands = 0 : i64, tpu.core_type = #tpu.core_type<tc>, window_params = [{transform_indices = @transform_0, window_bounds = array<i64: 1, 16, 8>}, {pipeline_mode = #tpu.pipeline_mode<synchronous>, transform_indices = @transform_1, window_bounds = array<i64: 16, 16>}, {transform_indices = @transform_2, window_bounds = array<i64: 1>}, {transform_indices = @transform_3, window_bounds = array<i64: 1, 16, 8>}]} {
    %c0 = arith.constant 0 : index
    %c0_0 = arith.constant 0 : index
    %c0_1 = arith.constant 0 : index
    %0 = vector.load %arg2[%c0, %c0_0, %c0_1] : memref<1x16x8xf32, #tpu.memory_space<vmem>>, vector<1x16x8xf32>
    %1 = vector.shape_cast %0 : vector<1x16x8xf32> to vector<16x8xf32>
    %c0_2 = arith.constant 0 : index
    %c0_3 = arith.constant 0 : index
    %2 = vector.load %arg3[%c0_2, %c0_3] : memref<16x16xf32, #tpu.memory_space<vmem>>, vector<16x16xf32>
    %c0_4 = arith.constant 0 : index
    %3 = memref.load %arg4[%c0_4] : memref<1xf32, #tpu.memory_space<smem>>
    %cst = arith.constant dense<0.000000e+00> : vector<16x8xf32>
    %4 = tpu.matmul %2, %1, %cst {dimension_numbers = #tpu.dot_dimension_numbers<[1], [0], [0], [1], [0, 0, 1, 1], [], []>} : vector<16x16xf32>, vector<16x8xf32>, vector<16x8xf32> -> vector<16x8xf32>
    %cst_5 = arith.constant dense<0xFF800000> : vector<8xf32>
    %5 = vector.multi_reduction <maximumf>, %4, %cst_5 [0] : vector<16x8xf32> to vector<8xf32>
    %6 = vector.shape_cast %5 : vector<8xf32> to vector<1x8xf32>
    %7 = vector.broadcast %6 : vector<1x8xf32> to vector<16x8xf32>
    %8 = arith.subf %4, %7 : vector<16x8xf32>
    %9 = math.exp %8 : vector<16x8xf32>
    %cst_6 = arith.constant dense<0.000000e+00> : vector<8xf32>
    %10 = vector.multi_reduction <add>, %9, %cst_6 [0] : vector<16x8xf32> to vector<8xf32>
    %11 = vector.shape_cast %10 : vector<8xf32> to vector<1x8xf32>
    %12 = tpu.reciprocal %11 {approx = true} : vector<1x8xf32> -> vector<1x8xf32>
    %13 = vector.broadcast %12 : vector<1x8xf32> to vector<16x8xf32>
    %14 = arith.mulf %9, %13 : vector<16x8xf32>
    %cst_7 = arith.constant 1.000000e+00 : f32
    %15 = arith.subf %cst_7, %3 : f32
    %16 = vector.broadcast %15 : f32 to vector<16x8xf32>
    %17 = arith.mulf %16, %14 : vector<16x8xf32>
    %18 = vector.broadcast %3 : f32 to vector<16x8xf32>
    %19 = arith.addf %18, %17 : vector<16x8xf32>
    %20 = arith.mulf %1, %19 : vector<16x8xf32>
    %c0_8 = arith.constant 0 : index
    %c0_9 = arith.constant 0 : index
    %c0_10 = arith.constant 0 : index
    %21 = vector.load %arg5[%c0_8, %c0_9, %c0_10] : memref<1x16x8xf32, #tpu.memory_space<vmem>>, vector<1x16x8xf32>
    %22 = vector.shape_cast %21 : vector<1x16x8xf32> to vector<16x8xf32>
    %23 = vector.shape_cast %20 : vector<16x8xf32> to vector<1x16x8xf32>
    tpu.vector_store %arg5[%c0_8, %c0_9, %c0_10], %23 {strides = array<i32>} : memref<1x16x8xf32, #tpu.memory_space<vmem>>, vector<1x16x8xf32>,
    return
  }
  func.func @transform_0(%arg0: i32, %arg1: i32) -> (i32, i32, i32) {
    %c0_i32 = arith.constant 0 : i32
    %c0_i32_0 = arith.constant 0 : i32
    return %arg0, %c0_i32, %arg1 : i32, i32, i32
  }
  func.func @transform_1(%arg0: i32, %arg1: i32) -> (i32, i32) {
    %c0_i32 = arith.constant 0 : i32
    %c0_i32_0 = arith.constant 0 : i32
    %c0_i32_1 = arith.constant 0 : i32
    return %c0_i32, %c0_i32_0 : i32, i32
  }
  func.func @transform_2(%arg0: i32, %arg1: i32) -> i32 {
    %c0_i32 = arith.constant 0 : i32
    %c0_i32_0 = arith.constant 0 : i32
    return %c0_i32 : i32
  }
  func.func @transform_3(%arg0: i32, %arg1: i32) -> (i32, i32, i32) {
    %c0_i32 = arith.constant 0 : i32
    %c0_i32_0 = arith.constant 0 : i32
    return %arg0, %c0_i32, %arg1 : i32, i32, i32
  }
}

</mosaic_0001>

<bundles_post_ra>
// kernel: tpu_custom_call.1
= control target key start
LH: loop header
LB: loop body
LE: loop exit
PB: predicated region body
PF: predicated region fallthrough
CT: control target
= control target key end

     0   :  { %s515_s14 = smov 0   ;;  %s517_s15 = smov 0   ;;  %s567_s0 = inlined_call_operand.vmem [shape: f32[2,16,8], index: 0, kind: input, shape index: {}]   ;;  %s568_s1 = inlined_call_operand.vmem [shape: f32[16,16], index: 1, kind: input, shape index: {}]   ;;  %s569_s2 = inlined_call_operand.<no memory space> [shape: f32[1], index: 2, kind: input, shape index: {}]   ;;  %s570_s3 = inlined_call_operand.vmem [shape: f32[2,16,8], index: 3, kind: output, shape index: {}]  }
   0x1   :  { %8 = sst [smem:[#allocation2]] %s569_s2  ;;  %s519_s16 = smov 0  }
   0x2 LB: > { %s26_s2 = sadd.s32 1, %s486_s15  ;;  %p416_p0 = scmp.ge.s32.totalorder %s490_s16, 1  ;;  %s490_s16 = sphi %s519_s16, %s14_s16   ;;  %s486_s15 = sphi %s517_s15, %s572_s15   ;;  %s482_s14 = sphi %s515_s14, %s571_s14  }
   0x3   : > { %p28_p1 = scmp.ge.s32.totalorder %s26_s2, 2  ;;  %p157_p2 = scmp.lt.s32.totalorder %s490_s16, 3 }
   0x5   : > { %s574_s2 = smov (%p28_p1, %s26_s2), 0  ;;  %p158_p3 = pnand %p416_p0, %p157_p2 }
   0x6   : > { %p187_p4 = scmp.lt.s32.totalorder (!%p158_p3), %s482_s14, 1  ;;  %s207_s25 = sld [smem:[#allocation2]] (!%p158_p3) }
   0x7   : > { %161 = sbr.rel (%p158_p3) target bundleno = 287 (0x11f), region = 32 }
   0xc   : > { %v205_v0 = vld [vmem:[%s568_s1] sm:$0xff]  ;;  %vm208_vm0 = vcmask 130048   ;;  %s576_s14 = smov (!%p187_p4, %s482_s14), 1  ;;  %v206_v3 = vld [vmem:[%s568_s1 + $0x8] sm:$0xff]  ;;  %vm290_vm1 = vcmask 64512   ;;  %s318_s26 = ssub.f32 1.0, %s207_s25  ;;  %v322_v34 = vstv %s207_s25 }
   0xd   : > { %435 = vmatprep.mubr.msk.f32.mxu0 %vm208_vm0, %v205_v0  ;;  %s425_s19 = sshll.u32 %s576_s14, 4 }
   0xe   : > { %s194_s22 = scalar_lea.vmem %s567_s0, %s425_s19  ;;  %v319_v31 = vstv %s318_s26  ;;  %s202_s29 = scalar_lea.vmem %s570_s3, %s425_s19 }
   0xf   : > { %v204_v1 = vld [vmem:[%s194_s22 + $0x8] sm:$0xff]  ;;  %v203_v2 = vld [vmem:[%s194_s22] sm:$0xff] }
  0x10   : > { %431 = vmatprep.subr.mxu0 %v204_v1 }
  0x11   : > { %432 = vmatpush3.msra.mxu0 %v204_v1 }
  0x12   : > { %433 = vmatprep.subr.mxu0 %v203_v2 }
  0x13   : > { %434 = vmatpush3.msra.mxu0 %v203_v2 }
  0x14   : > { %436 = vmatmul.mubr.msk.f32.vlgmr.msra.gmra.mxu0 %vm208_vm0, %v206_v3 }
  0xd4   : > { %v437_v4 = vpop.f32.mrf.mxu0 }
  0xd5   : > { %v292_v6 = vsel %vm290_vm1, %v437_v4, -inf }
  0xd6   : > { %v281_v5 = vpop.f32.mrf.mxu0 }
  0xd7   : > { %v291_v7 = vsel %vm290_vm1, %v281_v5, -inf }
  0xd8   : > { %v293_v8 = vmax.f32 %v291_v7, %v292_v6 }
  0xda   : > { %v294_v9 = vrot.slane %v293_v8, 4 }
  0xdc   : > { %v295_v10 = vmax.f32 %v293_v8, %v294_v9 }
  0xde   : > { %v296_v11 = vrot.slane %v295_v10, 2 }
  0xe0   : > { %v297_v12 = vmax.f32 %v295_v10, %v296_v11 }
  0xe2   : > { %v298_v13 = vrot.slane %v297_v12, 1 }
  0xe4   : > { %v299_v14 = vmax.f32 %v297_v12, %v298_v13 }
  0xe6   : > { %v300_v15 = vsub.f32 %v281_v5, %v299_v14  ;;  %v301_v16 = vsub.f32 %v437_v4, %v299_v14 }
  0xe8   : > { %v302_v17 = vmul.f32 1.442695, %v300_v15  ;;  %v304_v18 = vmul.f32 1.442695, %v301_v16 }
  0xea   : > { %462 = vpow2.f32 %v302_v17 }
  0xeb   : > { %464 = vpow2.f32 %v304_v18 }
  0xf7   : > { %v463_v19 = vpop.eup %462 }
  0xf8   : > { %v465_v20 = vpop.eup %464  ;;  %v306_v21 = vsel %vm290_vm1, %v463_v19, 0.0 }
  0xf9   : > { %v307_v22 = vsel %vm290_vm1, %v465_v20, 0.0 }
  0xfa   : > { %v308_v23 = vadd.f32 %v307_v22, %v306_v21 }
  0xfc   : > { %v309_v24 = vrot.slane %v308_v23, 4 }
  0xfe   : > { %v310_v25 = vadd.f32 %v309_v24, %v308_v23 }
 0x100   : > { %v311_v26 = vrot.slane %v310_v25, 2 }
 0x102   : > { %v312_v27 = vadd.f32 %v311_v26, %v310_v25 }
 0x104   : > { %v313_v28 = vrot.slane %v312_v27, 1 }
 0x106   : > { %v314_v29 = vadd.f32 %v313_v28, %v312_v27 }
 0x108   : > { %466 = vrcp.f32 %v314_v29 }
 0x115   : > { %v467_v30 = vpop.eup %466 }
 0x116   : > { %v316_v32 = vmul.f32 %v467_v30, %v463_v19  ;;  %v317_v33 = vmul.f32 %v467_v30, %v465_v20 }
 0x118   : > { %v320_v35 = vmul.f32 %v319_v31, %v316_v32  ;;  %v321_v36 = vmul.f32 %v319_v31, %v317_v33 }
 0x11a   : > { %v323_v37 = vadd.f32 %v322_v34, %v320_v35  ;;  %v324_v38 = vadd.f32 %v322_v34, %v321_v36 }
 0x11c   : > { %v325_v39 = vmul.f32 %v323_v37, %v203_v2  ;;  %v326_v40 = vmul.f32 %v324_v38, %v204_v1 }
 0x11e   : > { %327 = vst.msk [vmem:[%s202_s29] sm:$0xff] %vm290_vm1, %v325_v39  ;;  %328 = vst.msk [vmem:[%s202_s29 + $0x8] sm:$0xff] %vm290_vm1, %v326_v40 }
 0x11f PF: > { %s14_s16 = sadd.s32 1, %s490_s16   ;;  %s571_s14 = smov %s486_s15 }
 0x120   : > { %p11_p5 = scmp.ge.s32.totalorder %s14_s16, 4   ;;  %s572_s15 = smov %s574_s2 }
 0x122   :  { %13 = sbr.rel (!%p11_p5) target bundleno = 2 (0x2), region = 62 }

</bundles_post_ra>
